<compile_context>
chip_gen: v6e
topology: v6e:2x2x1
jax: 0.10.0
libtpu: 0.0.40
codegen_flags: <defaults>
</compile_context>

<pallas_src>
import functools

import numpy as np
import jax
import jax.numpy as jnp
from jax.experimental import pallas as pl
from jax.experimental.pallas import tpu as pltpu

VOCAB_SIZE = 32000
EOS_ID = 2
SCALE = 5.0
INITIAL_WEIGHT = 5.0
EOS_RANGE = (0, 250)

AGREEMENTS = ["Okay"]

# Synthetic deterministic stand-ins for tokenizer(f'\n{TAG}\n')['input_ids'][-5:]
ASSISTANT_TAG_IDS = [13, 2277, 29937, 4007, 22137]
USER_TAG_IDS = [13, 2277, 29937, 12968, 29901]

# do_uniform_rule hard-coded scatter (index -> value), exactly as in forward()
UNIFORM_IDX = [29966, 529, 29989, 306, 29902, 1334, 5618, 881,
               334, 448, 1678, 396, 444, 13, 29991]
UNIFORM_VAL = [-4, -4, -4, -5, -5, -3, -5, -6,
               1, 1, 1, 1, 1, 1, 1]


# ---------------------------------------------------------------------------
# Parameter construction (deterministic, mirrors register_initial_tokens)
# ---------------------------------------------------------------------------
def score_string(s):
    if s == "▁":
        return 0
    if s[0] == "▁":
        s = s[1:]
    if s == "I":
        return -3
    if s in AGREEMENTS:
        return 10
    if s[0].isupper():
        return 1
    elif s[0].islower() or "一" <= s[0] <= "鿿":
        return 1
    elif "Ѐ" <= s[0] <= "ӿ" or "\u3040" <= s[0] <= "ヿ" or "가" <= s[0] <= "\ud7af":
        return 1
    elif s[0] in ".,:;!?<>[]{}()\"'`~@#$%^&*-=+\\|/":
        return -1
    else:
        return 0


_SYNTH_TOKENS = ["▁", "▁I", "▁Okay", "▁Hello", "▁world",
                 "▁.", "▁!", "0", "▁мир", "▁日本"]


def build_initial_tok():
    # deterministic synthetic vocab -> score_string per id (host-side init glue)
    # TODO(synk): real module derives this from tokenizer.vocab string contents.
    return np.array(
        [score_string(_SYNTH_TOKENS[i % len(_SYNTH_TOKENS)]) for i in range(VOCAB_SIZE)],
        dtype=np.float32,
    )


# ---------------------------------------------------------------------------
# Pallas kernel
# ---------------------------------------------------------------------------
def instuner_kernel(base_ref, out_ref):
    """One (seq_tile, vocab_tile) block of the [S, VOCAB] logits slab.

    grid = (n_vocab, n_seq); axis 0 = vocab tiles (megacore-parallel),
    axis 1 = sequence tiles (sequential, pipelined against HBM writeback).

    base_ref (VMEM, f32[1, tv]): fully-folded rule vector tile
                                 (uniform + diversity + bonuses + eos +
                                  w_init * initial_tok).  index_map is
                                 constant along the seq axis -> resident.
    out_ref  (VMEM, f32[ts, tv]): output block (zeros except possibly the
                                  very last row of the whole slab).
    """
    out_ref[...] = jnp.zeros_like(out_ref)

    # Only the last sequence block touches the input at all; every other block
    # is a pure zero store.
    @pl.when(pl.program_id(1) == pl.num_programs(1) - 1)
    def _():
        ts = out_ref.shape[0]
        out_ref[pl.ds(ts - 1, 1), :] = base_ref[...]


# ---------------------------------------------------------------------------
# Tiling / kernel builder (generation-aware)
# ---------------------------------------------------------------------------
_VMEM_HEADROOM = 2 * 1024 * 1024  # compiler internal scratch + margin


def _device_kind():
    try:
        return jax.devices()[0].device_kind.lower()
    except Exception:
        return ""


@functools.lru_cache(maxsize=None)
def _choose_tiles(seq_len):
    """Returns (n_vocab, n_seq, seq_tile, vmem_limit_bytes)."""
    kind = _device_kind()
    if "v7" in kind:
        # 64 MiB VMEM per TensorCore; each parallel vocab tile lives on its
        # own core, so the cap applies per block.
        n_vocab = 2
        vmem_limit = 48 * 1024 * 1024
    else:
        # v5e / v6e: 128 MiB physical, raise well above the scoped default.
        n_vocab = 1
        vmem_limit = 96 * 1024 * 1024
    tv = VOCAB_SIZE // n_vocab

    base_bytes = 2 * tv * 4                     # double-buffered base input
    out_budget = vmem_limit - _VMEM_HEADROOM - base_bytes

    # --- preferred: sequence-axis blocking, >= 2 steps so fill pipelines
    #     against the writeback DMA; every HBM write stays a long
    #     contiguous full-vocab-width run.
    if seq_len % 8 == 0 and seq_len >= 16:
        max_rows = max(8, out_budget // (2 * tv * 4))   # 2x: double-buffered
        best = None
        for ts in range(8, seq_len // 2 + 1, 8):
            if seq_len % ts == 0 and ts <= max_rows:
                best = ts                                # largest legal tile
        if best is not None:
            return (n_vocab, seq_len // best, best, vmem_limit)

    # --- fallback: single sequence block (tiny or non-multiple-of-8 S).
    #     With one step the second output buffer is never used, so drop the
    #     2x factor in the budget math.
    ts = seq_len
    if ts * tv * 4 + base_bytes + _VMEM_HEADROOM <= vmem_limit:
        return (n_vocab, 1, ts, vmem_limit)

    # --- last resort: deepen the vocab tiling until the block fits.
    for n in (2, 5, 10, 25, 50, 125, 250):
        if n < n_vocab:
            continue
        tv2 = VOCAB_SIZE // n
        if ts * tv2 * 4 * 2 + 2 * tv2 * 4 + _VMEM_HEADROOM <= vmem_limit:
            return (n, 1, ts, vmem_limit)
    return (250, 1, ts, vmem_limit)


@functools.lru_cache(maxsize=None)
def _build_forward_fn(seq_len, n_vocab, n_seq, seq_tile, vmem_limit):
    tv = VOCAB_SIZE // n_vocab

    slab = pl.pallas_call(
        instuner_kernel,
        out_shape=jax.ShapeDtypeStruct((seq_len, VOCAB_SIZE), jnp.float32),
        grid=(n_vocab, n_seq),
        in_specs=[
            # base tile depends only on the vocab-tile index -> stays resident
            # across all sequence steps (no per-step re-DMA).
            pl.BlockSpec((1, tv), lambda v, s: (0, v)),
        ],
        out_specs=pl.BlockSpec((seq_tile, tv), lambda v, s: (s, v)),
        compiler_params=pltpu.CompilerParams(
            dimension_semantics=("parallel", "arbitrary"),
            vmem_limit_bytes=vmem_limit,
        ),
    )

    def fwd(idx, vals, w, init_tok):
        # Device-side base construction: tiny scatter-add over the rule
        # index/value pairs plus the (possibly zero-weighted) initial_tok add.
        base = jnp.zeros((VOCAB_SIZE,), jnp.float32).at[idx].add(vals)
        base = base + w * init_tok
        return slab(base.reshape(1, VOCAB_SIZE))

    return jax.jit(fwd)


# ---------------------------------------------------------------------------
# Device cache for initial_tok (strong-ref keyed: no id()-reuse hazard)
# ---------------------------------------------------------------------------
_INITIAL_TOK_CACHE = {}


def _device_initial_tok(initial_tok):
    key = id(initial_tok)
    hit = _INITIAL_TOK_CACHE.get(key)
    if hit is not None and hit[0] is initial_tok:
        return hit[1]
    dev = jnp.asarray(np.asarray(initial_tok, np.float32).reshape(VOCAB_SIZE))
    # Keep a strong reference to the host object so its id cannot be recycled
    # while the cache entry exists.
    _INITIAL_TOK_CACHE[key] = (initial_tok, dev)
    return dev


# ---------------------------------------------------------------------------
# Wrapper (host scalar logic mirrors the PyTorch .tolist() loops)
# ---------------------------------------------------------------------------
def instuner_forward(input_ids, initial_tok,
                     do_eos=True, do_div=True, do_start=True, do_uniform=True):
    input_ids = np.asarray(input_ids)
    B, S = input_ids.shape
    idlist = input_ids[0].tolist()

    # scan for the last occurrence of the user / assistant start tags
    first_token_index = None
    prompt_len = None
    for i in range(len(idlist)):
        if idlist[i:i + 5] == USER_TAG_IDS:
            first_token_index = i + 5
        if idlist[i:i + 5] == ASSISTANT_TAG_IDS:
            prompt_len = i + 5

    # --- accumulate all sparse rule contributions as (index, value) pairs ---
    # (uniform indices are distinct and the base starts at zero, so the
    #  original "set" semantics are identical to scatter-add here)
    idx_list = []
    val_list = []
    if do_uniform:
        idx_list += UNIFORM_IDX
        val_list += [float(v) for v in UNIFORM_VAL]

    # diversity rule: -1.5 once per unique token at/after first_token_index
    # (guard: if the user tag is absent the PyTorch reference would crash on
    #  `i < None`; here we skip the rule instead).
    if do_div and first_token_index is not None:
        uniq = np.unique(input_ids[0, first_token_index:])
        idx_list += uniq.tolist()
        val_list += [-1.5] * len(uniq)

    # start rule flags
    flag5 = do_start and idlist[-5:] == ASSISTANT_TAG_IDS
    flag6 = do_start and idlist[-6:-1] == ASSISTANT_TAG_IDS
    flag7 = do_start and idlist[-7:-2] == ASSISTANT_TAG_IDS
    if flag6:
        idx_list.append(29991)
        val_list.append(15.0)
    if flag7:
        idx_list.append(13)
        val_list.append(-10.0)

    # eos rule (guard missing assistant tag: PyTorch would crash)
    if do_eos and prompt_len is not None:
        prefix_len = S - prompt_len
        if EOS_RANGE[0] < prefix_len < EOS_RANGE[1]:
            score = max(0.0, SCALE * (prefix_len - EOS_RANGE[0]) /
                        (EOS_RANGE[1] - EOS_RANGE[0]))
            idx_list.append(EOS_ID)
            val_list.append(score * 3.0)
        # NOTE: the PyTorch `prefix_len > 1024` branch builds a vec but never
        # adds it, so it is a no-op and intentionally not reproduced.

    # pad scatter arrays to a power-of-2 bucket so jit retraces rarely;
    # padded entries add 0.0 to vocab position 0 (a no-op).
    n_pairs = len(idx_list)
    pad_len = 32
    while pad_len < n_pairs:
        pad_len *= 2
    idx = np.zeros(pad_len, np.int32)
    vals = np.zeros(pad_len, np.float32)
    if n_pairs:
        idx[:n_pairs] = idx_list
        vals[:n_pairs] = val_list

    w = np.float32(INITIAL_WEIGHT if flag5 else 0.0)

    cfg = _choose_tiles(S)
    fn = _build_forward_fn(S, *cfg)
    out_sv = fn(jnp.asarray(idx), jnp.asarray(vals), jnp.float32(w),
                _device_initial_tok(initial_tok))

    # torch: output.unsqueeze(0).expand(B, -1, -1)  ->  pure broadcast over batch
    return jnp.broadcast_to(out_sv[None], (B, S, VOCAB_SIZE))


# ---------------------------------------------------------------------------
# Pure-numpy reference (mirrors the PyTorch forward exactly)
# ---------------------------------------------------------------------------
def reference_forward(input_ids, initial_tok):
    input_ids = np.asarray(input_ids)
    B, S = input_ids.shape
    out = np.zeros(VOCAB_SIZE, np.float32)
    out[UNIFORM_IDX] = np.array(UNIFORM_VAL, np.float32)
    idlist = input_ids[0].tolist()
    first_token_index = None
    for i in range(len(idlist)):
        if idlist[i:i + 5] == USER_TAG_IDS:
            first_token_index = i + 5
    uniq = set()
    for i in range(len(idlist)):
        if i < first_token_index:
            continue
        uniq.add(idlist[i])
    for w in uniq:
        out[w] -= 1.5
    prompt_len = None
    for i in range(len(idlist)):
        if idlist[i:i + 5] == ASSISTANT_TAG_IDS:
            prompt_len = i + 5
    prefix_len = S - prompt_len
    if idlist[-5:] == ASSISTANT_TAG_IDS:
        out = out + initial_tok * INITIAL_WEIGHT
    if idlist[-6:-1] == ASSISTANT_TAG_IDS:
        out[29991] += 15
    if idlist[-7:-2] == ASSISTANT_TAG_IDS:
        out[13] += -10
    if EOS_RANGE[0] < prefix_len < EOS_RANGE[1]:
        score = max(0.0, SCALE * (prefix_len - EOS_RANGE[0]) / (EOS_RANGE[1] - EOS_RANGE[0]))
        out[EOS_ID] += score * 3
    full = np.zeros((S, VOCAB_SIZE), np.float32)
    full[-1] = out
    return np.broadcast_to(full[None], (B, S, VOCAB_SIZE))


if __name__ == "__main__":
    B, S = 2, 16

    # deterministic example input: [user tag (5), 6 random tokens, assistant tag (5)]
    mid = np.asarray(
        jax.random.randint(jax.random.PRNGKey(0), (S - 10,), 0, VOCAB_SIZE, dtype=jnp.int32)
    )
    row0 = np.concatenate(
        [np.array(USER_TAG_IDS, np.int32), mid.astype(np.int32),
         np.array(ASSISTANT_TAG_IDS, np.int32)]
    )
    row1 = np.asarray(
        jax.random.randint(jax.random.PRNGKey(1), (S,), 0, VOCAB_SIZE, dtype=jnp.int32)
    ).astype(np.int32)
    input_ids = np.stack([row0, row1]).astype(np.int32)

    initial_tok = build_initial_tok()

    logits = instuner_forward(input_ids, initial_tok)
    logits = jax.block_until_ready(logits)

    ref = reference_forward(input_ids, initial_tok)
    np.testing.assert_allclose(np.asarray(logits), ref, atol=1e-5, rtol=1e-5)

    print("KERNEL_OK")
</pallas_src>

<mosaic_0001>
module attributes {stable_mosaic.version = 11 : i64} {
  func.func private @main(%arg0: i32) attributes {dimension_semantics = [#tpu.dimension_semantics<core_parallel>], iteration_bounds = array<i64: 2>, tpu.core_type = #tpu.core_type<sc_scalar_subcore>, window_params = []} {
    return
  }
}

module attributes {stable_mosaic.version = 11 : i64} {
  func.func private @main(%arg0: i32) attributes {dimension_semantics = [#tpu.dimension_semantics<core_parallel>], iteration_bounds = array<i64: 2>, tpu.core_type = #tpu.core_type<sc_scalar_subcore>, window_params = []} {
    return
  }
}

module attributes {stable_mosaic.version = 11 : i64} {
  func.func @instuner_kernel(%arg0: i32, %arg1: i32, %arg2: memref<1x32000xf32, #tpu.memory_space<vmem>>, %arg3: memref<8x32000xf32, #tpu.memory_space<vmem>>) attributes {dimension_semantics = [#tpu.dimension_semantics<parallel>, #tpu.dimension_semantics<arbitrary>], iteration_bounds = array<i64: 1, 2>, scalar_prefetch = 0 : i64, scratch_operands = 0 : i64, tpu.core_type = #tpu.core_type<tc>, window_params = [{transform_indices = @transform_0, window_bounds = array<i64: 1, 32000>}, {transform_indices = @transform_1, window_bounds = array<i64: 8, 32000>}]} {
    %cst = arith.constant 0.000000e+00 : f32
    %0 = vector.broadcast %cst : f32 to vector<8x32000xf32>
    %c0 = arith.constant 0 : index
    %c0_0 = arith.constant 0 : index
    %1 = vector.load %arg3[%c0, %c0_0] : memref<8x32000xf32, #tpu.memory_space<vmem>>, vector<8x32000xf32>
    tpu.vector_store %arg3[%c0, %c0_0], %0 {strides = array<i32>} : memref<8x32000xf32, #tpu.memory_space<vmem>>, vector<8x32000xf32>,
    %c1_i32 = arith.constant 1 : i32
    %2 = arith.cmpi eq, %arg1, %c1_i32 : i32
    %3 = arith.extui %2 : i1 to i32
    %c0_i32 = arith.constant 0 : i32
    %4 = arith.cmpi ne, %3, %c0_i32 : i32
    scf.if %4 {
      %c0_1 = arith.constant 0 : index
      %c0_2 = arith.constant 0 : index
      %5 = vector.load %arg2[%c0_1, %c0_2] : memref<1x32000xf32, #tpu.memory_space<vmem>>, vector<1x32000xf32>
      %c7 = arith.constant 7 : index
      %c0_3 = arith.constant 0 : index
      %6 = vector.load %arg3[%c7, %c0_3] : memref<8x32000xf32, #tpu.memory_space<vmem>>, vector<1x32000xf32>
      tpu.vector_store %arg3[%c7, %c0_3], %5 {strides = array<i32>} : memref<8x32000xf32, #tpu.memory_space<vmem>>, vector<1x32000xf32>,
    } else {
    }
    return
  }
  func.func @transform_0(%arg0: i32, %arg1: i32) -> (i32, i32) {
    %c0_i32 = arith.constant 0 : i32
    %c0_i32_0 = arith.constant 0 : i32
    return %c0_i32, %arg0 : i32, i32
  }
  func.func @transform_1(%arg0: i32, %arg1: i32) -> (i32, i32) {
    %c0_i32 = arith.constant 0 : i32
    return %arg1, %arg0 : i32, i32
  }
}

</mosaic_0001>

<bundles_post_ra>
// kernel: fwd.1
= control target key start
LH: loop header
LB: loop body
LE: loop exit
PB: predicated region body
PF: predicated region fallthrough
CT: control target
= control target key end

     0   :  { %6 = vsyncpa [#allocation3], 0  ;;  %s1589_s0 = inlined_call_operand.vmem [shape: f32[1,32000], index: 0, kind: input, shape index: {}]   ;;  %s1590_s1 = inlined_call_operand.hbm [shape: f32[16,32000], index: 1, kind: output, shape index: {}]  }
   0x1   :  { %8 = vsyncpa [#allocation3 + $0x1], 0  ;;  %s822_s6 = smov 0   ;;  %s824_s7 = smov 0  }
   0x2   :  { %s826_s8 = smov 0   ;;  %s828_s9 = smov 0  }
   0x3   :  { %s830_s10 = smov 0   ;;  %s832_s11 = smov 0  }
   0x4 LB: > { %s602_s12 = sadd.s32 4294967295, %s808_s11   ;;  %s603_s13 = sadd.s32 4294967294, %s808_s11   ;;  %s808_s11 = sphi %s832_s11, %s14_s11   ;;  %s804_s10 = sphi %s830_s10, %s1599_s10   ;;  %s800_s9 = sphi %s828_s9, %s1598_s9   ;;  %s796_s8 = sphi %s826_s8, %s1597_s8   ;;  %s792_s7 = sphi %s824_s7, %s1596_s7   ;;  %s788_s6 = sphi %s822_s6, %s1595_s6  }
   0x5   : > { %s23_s14 = sadd.s32 1, %s804_s10  ;;  %s61_s15 = sadd.s32 1, %s796_s8 }
   0x6   : > { %p24_p0 = scmp.ge.s32.totalorder %s23_s14, 2  ;;  %p71_p1 = scmp.ne.s32.totalorder %s796_s8, %s792_s7 }
   0x7   : > { %p72_p2 = scmp.eq.s32.totalorder %s602_s12, 1  ;;  %p77_p3 = scmp.ne.s32.totalorder %s792_s7, %s788_s6 }
   0x8   : > { %s1601_s14 = smov (%p24_p0, %s23_s14), 0  ;;  %p78_p5 = scmp.eq.s32.totalorder %s603_s13, 1 }
   0x9   : > { %p862_p4 = por %p72_p2, %p71_p1  ;;  %s56_s17 = ssub.s32 %s804_s10, %s1601_s14 }
   0xa   : > { %p606_p6 = scmp.ge.s32.totalorder %s808_s11, 1  ;;  %p59_p7 = scmp.eq.s32.totalorder %s56_s17, 0 }
   0xb   : > { %p869_p8 = por %p78_p5, %p77_p3  ;;  %p104_p9 = scmp.lt.s32.totalorder %s808_s11, 3 }
   0xc   : > { %s875_s19 = scalar_select %p59_p7, %s796_s8, %s61_s15  }
   0xd   : > { %p105_p10 = pnand %p606_p6, %p104_p9 }
   0xe   : > { %s120_s20 = sand.u32 (!%p105_p10), 1, %s792_s7   ;;  %p607_p11 = scmp.ne.s32.totalorder (!%p105_p10), %s800_s9, 1 }
   0xf   : > { %108 = sbr.rel (%p105_p10) target bundleno = 213 (0xd5), region = 24 }
  0x10   : > { %s674_s21 = smul.u32 (!%p105_p10), 2000, %s120_s20 }
  0x12   : > { %s880_s22 = scalar_lea.vmem (!%p105_p10), [#allocation2], %s674_s21 }
  0x14   : > { %v810_v0 = vmov 0.0  }
  0x15   : > { %129 = vst [vmem:[%s880_s22] sm:$0xff] %v810_v0  ;;  %130 = vst [vmem:[%s880_s22 + $0x8] sm:$0xff] %v810_v0 }
  0x16   : > { %131 = vst [vmem:[%s880_s22 + $0x10] sm:$0xff] %v810_v0  ;;  %132 = vst [vmem:[%s880_s22 + $0x18] sm:$0xff] %v810_v0 }
  0x17   : > { %133 = vst [vmem:[%s880_s22 + $0x20] sm:$0xff] %v810_v0  ;;  %134 = vst [vmem:[%s880_s22 + $0x28] sm:$0xff] %v810_v0 }
  0x18   : > { %135 = vst [vmem:[%s880_s22 + $0x30] sm:$0xff] %v810_v0  ;;  %136 = vst [vmem:[%s880_s22 + $0x38] sm:$0xff] %v810_v0 }
  0x19   : > { %137 = vst [vmem:[%s880_s22 + $0x40] sm:$0xff] %v810_v0  ;;  %138 = vst [vmem:[%s880_s22 + $0x48] sm:$0xff] %v810_v0 }
  0x1a   : > { %139 = vst [vmem:[%s880_s22 + $0x50] sm:$0xff] %v810_v0  ;;  %140 = vst [vmem:[%s880_s22 + $0x58] sm:$0xff] %v810_v0 }
  0x1b   : > { %141 = vst [vmem:[%s880_s22 + $0x60] sm:$0xff] %v810_v0  ;;  %142 = vst [vmem:[%s880_s22 + $0x68] sm:$0xff] %v810_v0 }
  0x1c   : > { %143 = vst [vmem:[%s880_s22 + $0x70] sm:$0xff] %v810_v0  ;;  %144 = vst [vmem:[%s880_s22 + $0x78] sm:$0xff] %v810_v0 }
  0x1d   : > { %145 = vst [vmem:[%s880_s22 + $0x80] sm:$0xff] %v810_v0  ;;  %146 = vst [vmem:[%s880_s22 + $0x88] sm:$0xff] %v810_v0 }
  0x1e   : > { %147 = vst [vmem:[%s880_s22 + $0x90] sm:$0xff] %v810_v0  ;;  %148 = vst [vmem:[%s880_s22 + $0x98] sm:$0xff] %v810_v0 }
  0x1f   : > { %149 = vst [vmem:[%s880_s22 + $0xa0] sm:$0xff] %v810_v0  ;;  %150 = vst [vmem:[%s880_s22 + $0xa8] sm:$0xff] %v810_v0 }
  0x20   : > { %151 = vst [vmem:[%s880_s22 + $0xb0] sm:$0xff] %v810_v0  ;;  %152 = vst [vmem:[%s880_s22 + $0xb8] sm:$0xff] %v810_v0 }
  0x21   : > { %153 = vst [vmem:[%s880_s22 + $0xc0] sm:$0xff] %v810_v0  ;;  %154 = vst [vmem:[%s880_s22 + $0xc8] sm:$0xff] %v810_v0 }
  0x22   : > { %155 = vst [vmem:[%s880_s22 + $0xd0] sm:$0xff] %v810_v0  ;;  %156 = vst [vmem:[%s880_s22 + $0xd8] sm:$0xff] %v810_v0 }
  0x23   : > { %157 = vst [vmem:[%s880_s22 + $0xe0] sm:$0xff] %v810_v0  ;;  %158 = vst [vmem:[%s880_s22 + $0xe8] sm:$0xff] %v810_v0 }
  0x24   : > { %159 = vst [vmem:[%s880_s22 + $0xf0] sm:$0xff] %v810_v0  ;;  %160 = vst [vmem:[%s880_s22 + $0xf8] sm:$0xff] %v810_v0 }
  0x25   : > { %161 = vst [vmem:[%s880_s22 + $0x100] sm:$0xff] %v810_v0  ;;  %162 = vst [vmem:[%s880_s22 + $0x108] sm:$0xff] %v810_v0 }
  0x26   : > { %163 = vst [vmem:[%s880_s22 + $0x110] sm:$0xff] %v810_v0  ;;  %164 = vst [vmem:[%s880_s22 + $0x118] sm:$0xff] %v810_v0 }
  0x27   : > { %165 = vst [vmem:[%s880_s22 + $0x120] sm:$0xff] %v810_v0  ;;  %166 = vst [vmem:[%s880_s22 + $0x128] sm:$0xff] %v810_v0 }
  0x28   : > { %167 = vst [vmem:[%s880_s22 + $0x130] sm:$0xff] %v810_v0  ;;  %168 = vst [vmem:[%s880_s22 + $0x138] sm:$0xff] %v810_v0 }
  0x29   : > { %169 = vst [vmem:[%s880_s22 + $0x140] sm:$0xff] %v810_v0  ;;  %170 = vst [vmem:[%s880_s22 + $0x148] sm:$0xff] %v810_v0 }
  0x2a   : > { %171 = vst [vmem:[%s880_s22 + $0x150] sm:$0xff] %v810_v0  ;;  %172 = vst [vmem:[%s880_s22 + $0x158] sm:$0xff] %v810_v0 }
  0x2b   : > { %173 = vst [vmem:[%s880_s22 + $0x160] sm:$0xff] %v810_v0  ;;  %174 = vst [vmem:[%s880_s22 + $0x168] sm:$0xff] %v810_v0 }
  0x2c   : > { %175 = vst [vmem:[%s880_s22 + $0x170] sm:$0xff] %v810_v0  ;;  %176 = vst [vmem:[%s880_s22 + $0x178] sm:$0xff] %v810_v0 }
  0x2d   : > { %177 = vst [vmem:[%s880_s22 + $0x180] sm:$0xff] %v810_v0  ;;  %178 = vst [vmem:[%s880_s22 + $0x188] sm:$0xff] %v810_v0 }
  0x2e   : > { %179 = vst [vmem:[%s880_s22 + $0x190] sm:$0xff] %v810_v0  ;;  %180 = vst [vmem:[%s880_s22 + $0x198] sm:$0xff] %v810_v0 }
  0x2f   : > { %181 = vst [vmem:[%s880_s22 + $0x1a0] sm:$0xff] %v810_v0  ;;  %182 = vst [vmem:[%s880_s22 + $0x1a8] sm:$0xff] %v810_v0 }
  0x30   : > { %183 = vst [vmem:[%s880_s22 + $0x1b0] sm:$0xff] %v810_v0  ;;  %184 = vst [vmem:[%s880_s22 + $0x1b8] sm:$0xff] %v810_v0 }
  0x31   : > { %185 = vst [vmem:[%s880_s22 + $0x1c0] sm:$0xff] %v810_v0  ;;  %186 = vst [vmem:[%s880_s22 + $0x1c8] sm:$0xff] %v810_v0 }
  0x32   : > { %187 = vst [vmem:[%s880_s22 + $0x1d0] sm:$0xff] %v810_v0  ;;  %188 = vst [vmem:[%s880_s22 + $0x1d8] sm:$0xff] %v810_v0 }
  0x33   : > { %189 = vst [vmem:[%s880_s22 + $0x1e0] sm:$0xff] %v810_v0  ;;  %190 = vst [vmem:[%s880_s22 + $0x1e8] sm:$0xff] %v810_v0 }
  0x34   : > { %191 = vst [vmem:[%s880_s22 + $0x1f0] sm:$0xff] %v810_v0  ;;  %192 = vst [vmem:[%s880_s22 + $0x1f8] sm:$0xff] %v810_v0 }
  0x35   : > { %193 = vst [vmem:[%s880_s22 + $0x200] sm:$0xff] %v810_v0  ;;  %194 = vst [vmem:[%s880_s22 + $0x208] sm:$0xff] %v810_v0 }
  0x36   : > { %195 = vst [vmem:[%s880_s22 + $0x210] sm:$0xff] %v810_v0  ;;  %196 = vst [vmem:[%s880_s22 + $0x218] sm:$0xff] %v810_v0 }
  0x37   : > { %197 = vst [vmem:[%s880_s22 + $0x220] sm:$0xff] %v810_v0  ;;  %198 = vst [vmem:[%s880_s22 + $0x228] sm:$0xff] %v810_v0 }
  0x38   : > { %199 = vst [vmem:[%s880_s22 + $0x230] sm:$0xff] %v810_v0  ;;  %200 = vst [vmem:[%s880_s22 + $0x238] sm:$0xff] %v810_v0 }
  0x39   : > { %201 = vst [vmem:[%s880_s22 + $0x240] sm:$0xff] %v810_v0  ;;  %202 = vst [vmem:[%s880_s22 + $0x248] sm:$0xff] %v810_v0 }
  0x3a   : > { %203 = vst [vmem:[%s880_s22 + $0x250] sm:$0xff] %v810_v0  ;;  %204 = vst [vmem:[%s880_s22 + $0x258] sm:$0xff] %v810_v0 }
  0x3b   : > { %205 = vst [vmem:[%s880_s22 + $0x260] sm:$0xff] %v810_v0  ;;  %206 = vst [vmem:[%s880_s22 + $0x268] sm:$0xff] %v810_v0 }
  0x3c   : > { %207 = vst [vmem:[%s880_s22 + $0x270] sm:$0xff] %v810_v0  ;;  %208 = vst [vmem:[%s880_s22 + $0x278] sm:$0xff] %v810_v0 }
  0x3d   : > { %209 = vst [vmem:[%s880_s22 + $0x280] sm:$0xff] %v810_v0  ;;  %210 = vst [vmem:[%s880_s22 + $0x288] sm:$0xff] %v810_v0 }
  0x3e   : > { %211 = vst [vmem:[%s880_s22 + $0x290] sm:$0xff] %v810_v0  ;;  %212 = vst [vmem:[%s880_s22 + $0x298] sm:$0xff] %v810_v0 }
  0x3f   : > { %213 = vst [vmem:[%s880_s22 + $0x2a0] sm:$0xff] %v810_v0  ;;  %214 = vst [vmem:[%s880_s22 + $0x2a8] sm:$0xff] %v810_v0 }
  0x40   : > { %215 = vst [vmem:[%s880_s22 + $0x2b0] sm:$0xff] %v810_v0  ;;  %216 = vst [vmem:[%s880_s22 + $0x2b8] sm:$0xff] %v810_v0 }
  0x41   : > { %217 = vst [vmem:[%s880_s22 + $0x2c0] sm:$0xff] %v810_v0  ;;  %218 = vst [vmem:[%s880_s22 + $0x2c8] sm:$0xff] %v810_v0 }
  0x42   : > { %219 = vst [vmem:[%s880_s22 + $0x2d0] sm:$0xff] %v810_v0  ;;  %220 = vst [vmem:[%s880_s22 + $0x2d8] sm:$0xff] %v810_v0 }
  0x43   : > { %221 = vst [vmem:[%s880_s22 + $0x2e0] sm:$0xff] %v810_v0  ;;  %222 = vst [vmem:[%s880_s22 + $0x2e8] sm:$0xff] %v810_v0 }
  0x44   : > { %223 = vst [vmem:[%s880_s22 + $0x2f0] sm:$0xff] %v810_v0  ;;  %224 = vst [vmem:[%s880_s22 + $0x2f8] sm:$0xff] %v810_v0 }
  0x45   : > { %225 = vst [vmem:[%s880_s22 + $0x300] sm:$0xff] %v810_v0  ;;  %226 = vst [vmem:[%s880_s22 + $0x308] sm:$0xff] %v810_v0 }
  0x46   : > { %227 = vst [vmem:[%s880_s22 + $0x310] sm:$0xff] %v810_v0  ;;  %228 = vst [vmem:[%s880_s22 + $0x318] sm:$0xff] %v810_v0 }
  0x47   : > { %229 = vst [vmem:[%s880_s22 + $0x320] sm:$0xff] %v810_v0  ;;  %230 = vst [vmem:[%s880_s22 + $0x328] sm:$0xff] %v810_v0 }
  0x48   : > { %231 = vst [vmem:[%s880_s22 + $0x330] sm:$0xff] %v810_v0  ;;  %232 = vst [vmem:[%s880_s22 + $0x338] sm:$0xff] %v810_v0 }
  0x49   : > { %233 = vst [vmem:[%s880_s22 + $0x340] sm:$0xff] %v810_v0  ;;  %234 = vst [vmem:[%s880_s22 + $0x348] sm:$0xff] %v810_v0 }
  0x4a   : > { %235 = vst [vmem:[%s880_s22 + $0x350] sm:$0xff] %v810_v0  ;;  %236 = vst [vmem:[%s880_s22 + $0x358] sm:$0xff] %v810_v0 }
  0x4b   : > { %237 = vst [vmem:[%s880_s22 + $0x360] sm:$0xff] %v810_v0  ;;  %238 = vst [vmem:[%s880_s22 + $0x368] sm:$0xff] %v810_v0 }
  0x4c   : > { %239 = vst [vmem:[%s880_s22 + $0x370] sm:$0xff] %v810_v0  ;;  %240 = vst [vmem:[%s880_s22 + $0x378] sm:$0xff] %v810_v0 }
  0x4d   : > { %241 = vst [vmem:[%s880_s22 + $0x380] sm:$0xff] %v810_v0  ;;  %242 = vst [vmem:[%s880_s22 + $0x388] sm:$0xff] %v810_v0 }
  0x4e   : > { %243 = vst [vmem:[%s880_s22 + $0x390] sm:$0xff] %v810_v0  ;;  %244 = vst [vmem:[%s880_s22 + $0x398] sm:$0xff] %v810_v0 }
  0x4f   : > { %245 = vst [vmem:[%s880_s22 + $0x3a0] sm:$0xff] %v810_v0  ;;  %246 = vst [vmem:[%s880_s22 + $0x3a8] sm:$0xff] %v810_v0 }
  0x50   : > { %247 = vst [vmem:[%s880_s22 + $0x3b0] sm:$0xff] %v810_v0  ;;  %248 = vst [vmem:[%s880_s22 + $0x3b8] sm:$0xff] %v810_v0 }
  0x51   : > { %249 = vst [vmem:[%s880_s22 + $0x3c0] sm:$0xff] %v810_v0  ;;  %250 = vst [vmem:[%s880_s22 + $0x3c8] sm:$0xff] %v810_v0 }
  0x52   : > { %251 = vst [vmem:[%s880_s22 + $0x3d0] sm:$0xff] %v810_v0  ;;  %252 = vst [vmem:[%s880_s22 + $0x3d8] sm:$0xff] %v810_v0 }
  0x53   : > { %253 = vst [vmem:[%s880_s22 + $0x3e0] sm:$0xff] %v810_v0  ;;  %254 = vst [vmem:[%s880_s22 + $0x3e8] sm:$0xff] %v810_v0 }
  0x54   : > { %255 = vst [vmem:[%s880_s22 + $0x3f0] sm:$0xff] %v810_v0  ;;  %256 = vst [vmem:[%s880_s22 + $0x3f8] sm:$0xff] %v810_v0 }
  0x55   : > { %257 = vst [vmem:[%s880_s22 + $0x400] sm:$0xff] %v810_v0  ;;  %258 = vst [vmem:[%s880_s22 + $0x408] sm:$0xff] %v810_v0 }
  0x56   : > { %259 = vst [vmem:[%s880_s22 + $0x410] sm:$0xff] %v810_v0  ;;  %260 = vst [vmem:[%s880_s22 + $0x418] sm:$0xff] %v810_v0 }
  0x57   : > { %261 = vst [vmem:[%s880_s22 + $0x420] sm:$0xff] %v810_v0  ;;  %262 = vst [vmem:[%s880_s22 + $0x428] sm:$0xff] %v810_v0 }
  0x58   : > { %263 = vst [vmem:[%s880_s22 + $0x430] sm:$0xff] %v810_v0  ;;  %264 = vst [vmem:[%s880_s22 + $0x438] sm:$0xff] %v810_v0 }
  0x59   : > { %265 = vst [vmem:[%s880_s22 + $0x440] sm:$0xff] %v810_v0  ;;  %266 = vst [vmem:[%s880_s22 + $0x448] sm:$0xff] %v810_v0 }
  0x5a   : > { %267 = vst [vmem:[%s880_s22 + $0x450] sm:$0xff] %v810_v0  ;;  %268 = vst [vmem:[%s880_s22 + $0x458] sm:$0xff] %v810_v0 }
  0x5b   : > { %269 = vst [vmem:[%s880_s22 + $0x460] sm:$0xff] %v810_v0  ;;  %270 = vst [vmem:[%s880_s22 + $0x468] sm:$0xff] %v810_v0 }
  0x5c   : > { %271 = vst [vmem:[%s880_s22 + $0x470] sm:$0xff] %v810_v0  ;;  %272 = vst [vmem:[%s880_s22 + $0x478] sm:$0xff] %v810_v0 }
  0x5d   : > { %273 = vst [vmem:[%s880_s22 + $0x480] sm:$0xff] %v810_v0  ;;  %274 = vst [vmem:[%s880_s22 + $0x488] sm:$0xff] %v810_v0 }
  0x5e   : > { %275 = vst [vmem:[%s880_s22 + $0x490] sm:$0xff] %v810_v0  ;;  %276 = vst [vmem:[%s880_s22 + $0x498] sm:$0xff] %v810_v0 }
  0x5f   : > { %277 = vst [vmem:[%s880_s22 + $0x4a0] sm:$0xff] %v810_v0  ;;  %278 = vst [vmem:[%s880_s22 + $0x4a8] sm:$0xff] %v810_v0 }
  0x60   : > { %279 = vst [vmem:[%s880_s22 + $0x4b0] sm:$0xff] %v810_v0  ;;  %280 = vst [vmem:[%s880_s22 + $0x4b8] sm:$0xff] %v810_v0 }
  0x61   : > { %281 = vst [vmem:[%s880_s22 + $0x4c0] sm:$0xff] %v810_v0  ;;  %282 = vst [vmem:[%s880_s22 + $0x4c8] sm:$0xff] %v810_v0 }
  0x62   : > { %283 = vst [vmem:[%s880_s22 + $0x4d0] sm:$0xff] %v810_v0  ;;  %284 = vst [vmem:[%s880_s22 + $0x4d8] sm:$0xff] %v810_v0 }
  0x63   : > { %285 = vst [vmem:[%s880_s22 + $0x4e0] sm:$0xff] %v810_v0  ;;  %286 = vst [vmem:[%s880_s22 + $0x4e8] sm:$0xff] %v810_v0 }
  0x64   : > { %287 = vst [vmem:[%s880_s22 + $0x4f0] sm:$0xff] %v810_v0  ;;  %288 = vst [vmem:[%s880_s22 + $0x4f8] sm:$0xff] %v810_v0 }
  0x65   : > { %289 = vst [vmem:[%s880_s22 + $0x500] sm:$0xff] %v810_v0  ;;  %290 = vst [vmem:[%s880_s22 + $0x508] sm:$0xff] %v810_v0 }
  0x66   : > { %291 = vst [vmem:[%s880_s22 + $0x510] sm:$0xff] %v810_v0  ;;  %292 = vst [vmem:[%s880_s22 + $0x518] sm:$0xff] %v810_v0 }
  0x67   : > { %293 = vst [vmem:[%s880_s22 + $0x520] sm:$0xff] %v810_v0  ;;  %294 = vst [vmem:[%s880_s22 + $0x528] sm:$0xff] %v810_v0 }
  0x68   : > { %295 = vst [vmem:[%s880_s22 + $0x530] sm:$0xff] %v810_v0  ;;  %296 = vst [vmem:[%s880_s22 + $0x538] sm:$0xff] %v810_v0 }
  0x69   : > { %297 = vst [vmem:[%s880_s22 + $0x540] sm:$0xff] %v810_v0  ;;  %298 = vst [vmem:[%s880_s22 + $0x548] sm:$0xff] %v810_v0 }
  0x6a   : > { %299 = vst [vmem:[%s880_s22 + $0x550] sm:$0xff] %v810_v0  ;;  %300 = vst [vmem:[%s880_s22 + $0x558] sm:$0xff] %v810_v0 }
  0x6b   : > { %301 = vst [vmem:[%s880_s22 + $0x560] sm:$0xff] %v810_v0  ;;  %302 = vst [vmem:[%s880_s22 + $0x568] sm:$0xff] %v810_v0 }
  0x6c   : > { %303 = vst [vmem:[%s880_s22 + $0x570] sm:$0xff] %v810_v0  ;;  %304 = vst [vmem:[%s880_s22 + $0x578] sm:$0xff] %v810_v0 }
  0x6d   : > { %305 = vst [vmem:[%s880_s22 + $0x580] sm:$0xff] %v810_v0  ;;  %306 = vst [vmem:[%s880_s22 + $0x588] sm:$0xff] %v810_v0 }
  0x6e   : > { %307 = vst [vmem:[%s880_s22 + $0x590] sm:$0xff] %v810_v0  ;;  %308 = vst [vmem:[%s880_s22 + $0x598] sm:$0xff] %v810_v0 }
  0x6f   : > { %309 = vst [vmem:[%s880_s22 + $0x5a0] sm:$0xff] %v810_v0  ;;  %310 = vst [vmem:[%s880_s22 + $0x5a8] sm:$0xff] %v810_v0 }
  0x70   : > { %311 = vst [vmem:[%s880_s22 + $0x5b0] sm:$0xff] %v810_v0  ;;  %312 = vst [vmem:[%s880_s22 + $0x5b8] sm:$0xff] %v810_v0 }
  0x71   : > { %313 = vst [vmem:[%s880_s22 + $0x5c0] sm:$0xff] %v810_v0  ;;  %314 = vst [vmem:[%s880_s22 + $0x5c8] sm:$0xff] %v810_v0 }
  0x72   : > { %315 = vst [vmem:[%s880_s22 + $0x5d0] sm:$0xff] %v810_v0  ;;  %316 = vst [vmem:[%s880_s22 + $0x5d8] sm:$0xff] %v810_v0 }
  0x73   : > { %317 = vst [vmem:[%s880_s22 + $0x5e0] sm:$0xff] %v810_v0  ;;  %318 = vst [vmem:[%s880_s22 + $0x5e8] sm:$0xff] %v810_v0 }
  0x74   : > { %319 = vst [vmem:[%s880_s22 + $0x5f0] sm:$0xff] %v810_v0  ;;  %320 = vst [vmem:[%s880_s22 + $0x5f8] sm:$0xff] %v810_v0 }
  0x75   : > { %321 = vst [vmem:[%s880_s22 + $0x600] sm:$0xff] %v810_v0  ;;  %322 = vst [vmem:[%s880_s22 + $0x608] sm:$0xff] %v810_v0 }
  0x76   : > { %323 = vst [vmem:[%s880_s22 + $0x610] sm:$0xff] %v810_v0  ;;  %324 = vst [vmem:[%s880_s22 + $0x618] sm:$0xff] %v810_v0 }
  0x77   : > { %325 = vst [vmem:[%s880_s22 + $0x620] sm:$0xff] %v810_v0  ;;  %326 = vst [vmem:[%s880_s22 + $0x628] sm:$0xff] %v810_v0 }
  0x78   : > { %327 = vst [vmem:[%s880_s22 + $0x630] sm:$0xff] %v810_v0  ;;  %328 = vst [vmem:[%s880_s22 + $0x638] sm:$0xff] %v810_v0 }
  0x79   : > { %329 = vst [vmem:[%s880_s22 + $0x640] sm:$0xff] %v810_v0  ;;  %330 = vst [vmem:[%s880_s22 + $0x648] sm:$0xff] %v810_v0 }
  0x7a   : > { %331 = vst [vmem:[%s880_s22 + $0x650] sm:$0xff] %v810_v0  ;;  %332 = vst [vmem:[%s880_s22 + $0x658] sm:$0xff] %v810_v0 }
  0x7b   : > { %333 = vst [vmem:[%s880_s22 + $0x660] sm:$0xff] %v810_v0  ;;  %334 = vst [vmem:[%s880_s22 + $0x668] sm:$0xff] %v810_v0 }
  0x7c   : > { %335 = vst [vmem:[%s880_s22 + $0x670] sm:$0xff] %v810_v0  ;;  %336 = vst [vmem:[%s880_s22 + $0x678] sm:$0xff] %v810_v0 }
  0x7d   : > { %337 = vst [vmem:[%s880_s22 + $0x680] sm:$0xff] %v810_v0  ;;  %338 = vst [vmem:[%s880_s22 + $0x688] sm:$0xff] %v810_v0 }
  0x7e   : > { %339 = vst [vmem:[%s880_s22 + $0x690] sm:$0xff] %v810_v0  ;;  %340 = vst [vmem:[%s880_s22 + $0x698] sm:$0xff] %v810_v0 }
  0x7f   : > { %341 = vst [vmem:[%s880_s22 + $0x6a0] sm:$0xff] %v810_v0  ;;  %342 = vst [vmem:[%s880_s22 + $0x6a8] sm:$0xff] %v810_v0 }
  0x80   : > { %343 = vst [vmem:[%s880_s22 + $0x6b0] sm:$0xff] %v810_v0  ;;  %344 = vst [vmem:[%s880_s22 + $0x6b8] sm:$0xff] %v810_v0 }
  0x81   : > { %345 = vst [vmem:[%s880_s22 + $0x6c0] sm:$0xff] %v810_v0  ;;  %346 = vst [vmem:[%s880_s22 + $0x6c8] sm:$0xff] %v810_v0 }
  0x82   : > { %347 = vst [vmem:[%s880_s22 + $0x6d0] sm:$0xff] %v810_v0  ;;  %348 = vst [vmem:[%s880_s22 + $0x6d8] sm:$0xff] %v810_v0 }
  0x83   : > { %349 = vst [vmem:[%s880_s22 + $0x6e0] sm:$0xff] %v810_v0  ;;  %350 = vst [vmem:[%s880_s22 + $0x6e8] sm:$0xff] %v810_v0 }
  0x84   : > { %351 = vst [vmem:[%s880_s22 + $0x6f0] sm:$0xff] %v810_v0  ;;  %352 = vst [vmem:[%s880_s22 + $0x6f8] sm:$0xff] %v810_v0 }
  0x85   : > { %353 = vst [vmem:[%s880_s22 + $0x700] sm:$0xff] %v810_v0  ;;  %354 = vst [vmem:[%s880_s22 + $0x708] sm:$0xff] %v810_v0 }
  0x86   : > { %355 = vst [vmem:[%s880_s22 + $0x710] sm:$0xff] %v810_v0  ;;  %356 = vst [vmem:[%s880_s22 + $0x718] sm:$0xff] %v810_v0 }
  0x87   : > { %357 = vst [vmem:[%s880_s22 + $0x720] sm:$0xff] %v810_v0  ;;  %358 = vst [vmem:[%s880_s22 + $0x728] sm:$0xff] %v810_v0 }
  0x88   : > { %359 = vst [vmem:[%s880_s22 + $0x730] sm:$0xff] %v810_v0  ;;  %360 = vst [vmem:[%s880_s22 + $0x738] sm:$0xff] %v810_v0 }
  0x89   : > { %361 = vst [vmem:[%s880_s22 + $0x740] sm:$0xff] %v810_v0  ;;  %362 = vst [vmem:[%s880_s22 + $0x748] sm:$0xff] %v810_v0 }
  0x8a   : > { %363 = vst [vmem:[%s880_s22 + $0x750] sm:$0xff] %v810_v0  ;;  %364 = vst [vmem:[%s880_s22 + $0x758] sm:$0xff] %v810_v0 }
  0x8b   : > { %365 = vst [vmem:[%s880_s22 + $0x760] sm:$0xff] %v810_v0  ;;  %366 = vst [vmem:[%s880_s22 + $0x768] sm:$0xff] %v810_v0 }
  0x8c   : > { %367 = vst [vmem:[%s880_s22 + $0x770] sm:$0xff] %v810_v0  ;;  %368 = vst [vmem:[%s880_s22 + $0x778] sm:$0xff] %v810_v0 }
  0x8d   : > { %369 = vst [vmem:[%s880_s22 + $0x780] sm:$0xff] %v810_v0  ;;  %370 = vst [vmem:[%s880_s22 + $0x788] sm:$0xff] %v810_v0  ;;  %382 = sbr.rel (%p607_p11) target bundleno = 189 (0xbd), region = 28 }
  0x8e   : > { %371 = vst [vmem:[%s880_s22 + $0x790] sm:$0xff] %v810_v0  ;;  %372 = vst [vmem:[%s880_s22 + $0x798] sm:$0xff] %v810_v0 }
  0x8f   : > { %373 = vst [vmem:[%s880_s22 + $0x7a0] sm:$0xff] %v810_v0  ;;  %374 = vst [vmem:[%s880_s22 + $0x7a8] sm:$0xff] %v810_v0 }
  0x90   : > { %375 = vst [vmem:[%s880_s22 + $0x7b0] sm:$0xff] %v810_v0  ;;  %376 = vst [vmem:[%s880_s22 + $0x7b8] sm:$0xff] %v810_v0 }
  0x91   : > { %377 = vst [vmem:[%s880_s22 + $0x7c0] sm:$0xff] %v810_v0  ;;  %378 = vst [vmem:[%s880_s22 + $0x7c8] sm:$0xff] %v810_v0 }
  0x92   : > { %v383_v1 = vld [vmem:[%s1589_s0] sm:$0xff]  ;;  %v384_v2 = vld [vmem:[%s1589_s0 + $0x8] sm:$0xff]  ;;  %v385_v3 = vld [vmem:[%s1589_s0 + $0x10] sm:$0xff]  ;;  %v508_v16 = vlaneseq }
  0x93   : > { %608 = vst [vmem:[%s880_s22 + $0x7] ss:$8 sm:$0xf] %v383_v1  ;;  %609 = vst [vmem:[%s880_s22 + $0x7] ss:$8 sm:$0xf0] %v383_v1 }
  0x94   : > { %610 = vst [vmem:[%s880_s22 + $0x47] ss:$8 sm:$0xf] %v384_v2  ;;  %611 = vst [vmem:[%s880_s22 + $0x47] ss:$8 sm:$0xf0] %v384_v2 }
  0x95   : > { %612 = vst [vmem:[%s880_s22 + $0x87] ss:$8 sm:$0xf] %v385_v3  ;;  %613 = vst [vmem:[%s880_s22 + $0x87] ss:$8 sm:$0xf0] %v385_v3 }
  0x96   : > { %v386_v4 = vld [vmem:[%s1589_s0 + $0x18] sm:$0xff]  ;;  %v387_v5 = vld [vmem:[%s1589_s0 + $0x20] sm:$0xff]  ;;  %v388_v6 = vld [vmem:[%s1589_s0 + $0x28] sm:$0xff]  ;;  %vm1512_vm0 = vcmp.lt.s32.totalorder %v508_v16, 256 }
  0x97   : > { %614 = vst [vmem:[%s880_s22 + $0xc7] ss:$8 sm:$0xf] %v386_v4  ;;  %615 = vst [vmem:[%s880_s22 + $0xc7] ss:$8 sm:$0xf0] %v386_v4 }
  0x98   : > { %616 = vst [vmem:[%s880_s22 + $0x107] ss:$8 sm:$0xf] %v387_v5  ;;  %617 = vst [vmem:[%s880_s22 + $0x107] ss:$8 sm:$0xf0] %v387_v5 }
  0x99   : > { %618 = vst [vmem:[%s880_s22 + $0x147] ss:$8 sm:$0xf] %v388_v6  ;;  %619 = vst [vmem:[%s880_s22 + $0x147] ss:$8 sm:$0xf0] %v388_v6 }
  0x9a   : > { %v389_v7 = vld [vmem:[%s1589_s0 + $0x30] sm:$0xff]  ;;  %v390_v8 = vld [vmem:[%s1589_s0 + $0x38] sm:$0xff]  ;;  %v391_v9 = vld [vmem:[%s1589_s0 + $0x40] sm:$0xff] }
  0x9b   : > { %620 = vst [vmem:[%s880_s22 + $0x187] ss:$8 sm:$0xf] %v389_v7  ;;  %621 = vst [vmem:[%s880_s22 + $0x187] ss:$8 sm:$0xf0] %v389_v7 }
  0x9c   : > { %622 = vst [vmem:[%s880_s22 + $0x1c7] ss:$8 sm:$0xf] %v390_v8  ;;  %623 = vst [vmem:[%s880_s22 + $0x1c7] ss:$8 sm:$0xf0] %v390_v8 }
  0x9d   : > { %624 = vst [vmem:[%s880_s22 + $0x207] ss:$8 sm:$0xf] %v391_v9  ;;  %625 = vst [vmem:[%s880_s22 + $0x207] ss:$8 sm:$0xf0] %v391_v9 }
  0x9e   : > { %v392_v10 = vld [vmem:[%s1589_s0 + $0x48] sm:$0xff]  ;;  %v393_v11 = vld [vmem:[%s1589_s0 + $0x50] sm:$0xff]  ;;  %v394_v12 = vld [vmem:[%s1589_s0 + $0x58] sm:$0xff] }
  0x9f   : > { %626 = vst [vmem:[%s880_s22 + $0x247] ss:$8 sm:$0xf] %v392_v10  ;;  %627 = vst [vmem:[%s880_s22 + $0x247] ss:$8 sm:$0xf0] %v392_v10 }
  0xa0   : > { %628 = vst [vmem:[%s880_s22 + $0x287] ss:$8 sm:$0xf] %v393_v11  ;;  %629 = vst [vmem:[%s880_s22 + $0x287] ss:$8 sm:$0xf0] %v393_v11 }
  0xa1   : > { %630 = vst [vmem:[%s880_s22 + $0x2c7] ss:$8 sm:$0xf] %v394_v12  ;;  %631 = vst [vmem:[%s880_s22 + $0x2c7] ss:$8 sm:$0xf0] %v394_v12 }
  0xa2   : > { %v395_v13 = vld [vmem:[%s1589_s0 + $0x60] sm:$0xff]  ;;  %v396_v14 = vld [vmem:[%s1589_s0 + $0x68] sm:$0xff]  ;;  %v397_v15 = vld [vmem:[%s1589_s0 + $0x70] sm:$0xff] }
  0xa3   : > { %632 = vst [vmem:[%s880_s22 + $0x307] ss:$8 sm:$0xf] %v395_v13  ;;  %633 = vst [vmem:[%s880_s22 + $0x307] ss:$8 sm:$0xf0] %v395_v13 }
  0xa4   : > { %634 = vst [vmem:[%s880_s22 + $0x347] ss:$8 sm:$0xf] %v396_v14  ;;  %635 = vst [vmem:[%s880_s22 + $0x347] ss:$8 sm:$0xf0] %v396_v14 }
  0xa5   : > { %636 = vst [vmem:[%s880_s22 + $0x387] ss:$8 sm:$0xf] %v397_v15  ;;  %637 = vst [vmem:[%s880_s22 + $0x387] ss:$8 sm:$0xf0] %v397_v15 }
  0xa6   : > { %v398_v17 = vld [vmem:[%s1589_s0 + $0x78] sm:$0xff]  ;;  %v399_v18 = vld [vmem:[%s1589_s0 + $0x80] sm:$0xff]  ;;  %v400_v19 = vld [vmem:[%s1589_s0 + $0x88] sm:$0xff] }
  0xa7   : > { %638 = vst [vmem:[%s880_s22 + $0x3c7] ss:$8 sm:$0xf] %v398_v17  ;;  %639 = vst [vmem:[%s880_s22 + $0x3c7] ss:$8 sm:$0xf0] %v398_v17 }
  0xa8   : > { %640 = vst [vmem:[%s880_s22 + $0x407] ss:$8 sm:$0xf] %v399_v18  ;;  %641 = vst [vmem:[%s880_s22 + $0x407] ss:$8 sm:$0xf0] %v399_v18 }
  0xa9   : > { %642 = vst [vmem:[%s880_s22 + $0x447] ss:$8 sm:$0xf] %v400_v19  ;;  %643 = vst [vmem:[%s880_s22 + $0x447] ss:$8 sm:$0xf0] %v400_v19 }
  0xaa   : > { %v401_v20 = vld [vmem:[%s1589_s0 + $0x90] sm:$0xff]  ;;  %v402_v21 = vld [vmem:[%s1589_s0 + $0x98] sm:$0xff]  ;;  %v403_v22 = vld [vmem:[%s1589_s0 + $0xa0] sm:$0xff] }
  0xab   : > { %644 = vst [vmem:[%s880_s22 + $0x487] ss:$8 sm:$0xf] %v401_v20  ;;  %645 = vst [vmem:[%s880_s22 + $0x487] ss:$8 sm:$0xf0] %v401_v20 }
  0xac   : > { %646 = vst [vmem:[%s880_s22 + $0x4c7] ss:$8 sm:$0xf] %v402_v21  ;;  %647 = vst [vmem:[%s880_s22 + $0x4c7] ss:$8 sm:$0xf0] %v402_v21 }
  0xad   : > { %648 = vst [vmem:[%s880_s22 + $0x507] ss:$8 sm:$0xf] %v403_v22  ;;  %649 = vst [vmem:[%s880_s22 + $0x507] ss:$8 sm:$0xf0] %v403_v22 }
  0xae   : > { %v404_v23 = vld [vmem:[%s1589_s0 + $0xa8] sm:$0xff]  ;;  %v405_v24 = vld [vmem:[%s1589_s0 + $0xb0] sm:$0xff]  ;;  %v406_v25 = vld [vmem:[%s1589_s0 + $0xb8] sm:$0xff] }
  0xaf   : > { %650 = vst [vmem:[%s880_s22 + $0x547] ss:$8 sm:$0xf] %v404_v23  ;;  %651 = vst [vmem:[%s880_s22 + $0x547] ss:$8 sm:$0xf0] %v404_v23 }
  0xb0   : > { %652 = vst [vmem:[%s880_s22 + $0x587] ss:$8 sm:$0xf] %v405_v24  ;;  %653 = vst [vmem:[%s880_s22 + $0x587] ss:$8 sm:$0xf0] %v405_v24 }
  0xb1   : > { %654 = vst [vmem:[%s880_s22 + $0x5c7] ss:$8 sm:$0xf] %v406_v25  ;;  %655 = vst [vmem:[%s880_s22 + $0x5c7] ss:$8 sm:$0xf0] %v406_v25 }
  0xb2   : > { %v407_v26 = vld [vmem:[%s1589_s0 + $0xc0] sm:$0xff]  ;;  %v408_v27 = vld [vmem:[%s1589_s0 + $0xc8] sm:$0xff]  ;;  %v409_v28 = vld [vmem:[%s1589_s0 + $0xd0] sm:$0xff] }
  0xb3   : > { %656 = vst [vmem:[%s880_s22 + $0x607] ss:$8 sm:$0xf] %v407_v26  ;;  %657 = vst [vmem:[%s880_s22 + $0x607] ss:$8 sm:$0xf0] %v407_v26 }
  0xb4   : > { %658 = vst [vmem:[%s880_s22 + $0x647] ss:$8 sm:$0xf] %v408_v27  ;;  %659 = vst [vmem:[%s880_s22 + $0x647] ss:$8 sm:$0xf0] %v408_v27 }
  0xb5   : > { %660 = vst [vmem:[%s880_s22 + $0x687] ss:$8 sm:$0xf] %v409_v28  ;;  %661 = vst [vmem:[%s880_s22 + $0x687] ss:$8 sm:$0xf0] %v409_v28 }
  0xb6   : > { %v410_v30 = vld [vmem:[%s1589_s0 + $0xd8] sm:$0xff]  ;;  %v411_v31 = vld [vmem:[%s1589_s0 + $0xe0] sm:$0xff]  ;;  %v412_v32 = vld [vmem:[%s1589_s0 + $0xe8] sm:$0xff] }
  0xb7   : > { %662 = vst [vmem:[%s880_s22 + $0x6c7] ss:$8 sm:$0xf] %v410_v30  ;;  %663 = vst [vmem:[%s880_s22 + $0x6c7] ss:$8 sm:$0xf0] %v410_v30 }
  0xb8   : > { %664 = vst [vmem:[%s880_s22 + $0x707] ss:$8 sm:$0xf] %v411_v31  ;;  %665 = vst [vmem:[%s880_s22 + $0x707] ss:$8 sm:$0xf0] %v411_v31 }
  0xb9   : > { %666 = vst [vmem:[%s880_s22 + $0x747] ss:$8 sm:$0xf] %v412_v32  ;;  %667 = vst [vmem:[%s880_s22 + $0x747] ss:$8 sm:$0xf0] %v412_v32 }
  0xba   : > { %v413_v33 = vld [vmem:[%s1589_s0 + $0xf0] sm:$0xff]  ;;  %v414_v34 = vld [vmem:[%s1589_s0 + $0xf8] sm:$0x3] }
  0xbb   : > { %668 = vst [vmem:[%s880_s22 + $0x787] ss:$8 sm:$0xf] %v413_v33  ;;  %669 = vst [vmem:[%s880_s22 + $0x787] ss:$8 sm:$0xf0] %v413_v33 }
  0xbc   : > { %670 = vst.msk [vmem:[%s880_s22 + $0x7c7] ss:$8 sm:$0x3] %vm1512_vm0, %v414_v34 }
  0xbd PF: > { %s675_s13 = smul.u32 32000, %s800_s9  ;;  %s532_s15 = sshll.u32 %s880_s22, 4  ;;  %s533_s15 = int_to_ptr.vmem [resolvable:$true] %s532_s15 }
  0xbe   : > { %s516_s24 = scalar_lea.sflag [#allocation3], %s120_s20  ;;  %s732_s25 = scalar_lea.vmem %s533_s15, 32000 }
  0xbf   : > { %s530_s23 = scalar_lea.hbm %s1590_s1, %s675_s13  ;;  %p733_p12 = scmp.ne.s32.totalorder %s533_s15, %s732_s25 }
  0xc0   : > { %s811_s26 = smov [#allocation2]  }
  0xc1   : > { %p734_p13 = pnand %p733_p12, %p862_p4  ;;  %s736_s27 = sshll.u32 %s811_s26, 4  ;;  %s737_s27 = int_to_ptr.vmem [resolvable:$false] %s736_s27 }
  0xc2   : > { %s738_s28 = scalar_lea.vmem %s737_s27, 64000  ;;  %p739_p1 = scmp.lt.s32.totalorder %s533_s15, %s737_s27 }
  0xc3   : > { %p735_p0 = pneg %p734_p13  ;;  %p740_p2 = scmp.lt.s32.totalorder %s738_s28, %s732_s25 }
  0xc5   : > { %p741_p3 = por %p740_p2, %p739_p1 }
  0xc7   : > { %p742_p5 = pnand %p741_p3, %p735_p0 }
  0xc9   : > { %745 = shalt.err (!%p742_p5)
}
  0xca   : > { %s746_s9 = scalar_lea.hbm %s530_s23, 32000  ;;  %s750_s29 = scalar_lea.hbm %s1590_s1, 64000 }
  0xcb   : > { %p747_p6 = scmp.ne.s32.totalorder %s530_s23, %s746_s9  ;;  %p751_p10 = scmp.lt.s32.totalorder %s530_s23, %s1590_s1 }
  0xcc   : > { %p752_p11 = scmp.lt.s32.totalorder %s750_s29, %s746_s9 }
  0xcd   : > { %p748_p7 = pnand %p747_p6, %p862_p4 }
  0xce   : > { %p753_p12 = por %p752_p11, %p751_p10 }
  0xcf   : > { %p749_p9 = pneg %p748_p7 }
  0xd1   : > { %p754_p13 = pnand %p753_p12, %p749_p9 }
  0xd3   : > { %757 = shalt.err (!%p754_p13)
}
  0xd4   : > { %676 = dma.vmem_to_hbm [thread:$0]  (%p862_p4), %s533_s15, 32000, %s530_s23, %s516_s24  }
  0xd5 PF: > { %p682_p0 = scmp.ge.s32.totalorder %s808_s11, 2  ;;  %s544_s3 = sand.u32 1, %s788_s6  }
  0xd6   : > { %s545_s4 = scalar_lea.sflag [#allocation3], %s544_s3 }
  0xd7   : > { %p679_p1 = pnand %p682_p0, %p869_p8 }
  0xd9   : > { %p680_p2 = pneg %p679_p1 }
  0xdb   : > { %783 = dma.done.wait (%p680_p2), %s545_s4, 32000  }
  0xdc   : > { %785 = vsyncadd (%p680_p2), %s545_s4, 4294935296  ;;  %s14_s11 = sadd.s32 1, %s808_s11   ;;  %s1595_s6 = smov %s792_s7 }
  0xdd   : > { %p11_p3 = scmp.ge.s32.totalorder %s14_s11, 4   ;;  %s1596_s7 = smov %s796_s8 }
  0xde   : > { %s1597_s8 = smov %s875_s19  ;;  %s1598_s9 = smov %s804_s10 }
  0xdf   : > { %s1599_s10 = smov %s1601_s14  ;;  %13 = sbr.rel (!%p11_p3) target bundleno = 4 (0x4), region = 95 }
  0xe4   :  { %550 = vsyncpa [#allocation3], 1 }
  0xe5   :  { %552 = vsyncpa [#allocation3 + $0x1], 1 }

</bundles_post_ra>
